<compile_context>
chip_gen: v6e
topology: v6e:2x2x1
jax: 0.10.0
libtpu: 0.0.40
codegen_flags: <defaults>
</compile_context>

<pallas_src>
import functools

import jax
import jax.numpy as jnp
from jax.experimental import pallas as pl
from jax.experimental.pallas import tpu as pltpu


def _sep_conv_kernel(x_ref, dw_ref, pw_ref, shift_ref, out_ref, *,
                     TH, W, apply_swish, mxu_dtype):
    """One grid step = (batch element n, row tile r).

    x_ref     : (1, H+2, W+2, Cin)  zero-padded input (VMEM-resident across r)
    dw_ref    : (3, 3, Cin)         depthwise weights
    pw_ref    : (Cin, Cout)         pointwise weights with BN scale folded in
    shift_ref : (1, Cout)           folded pointwise-bias + BN shift
    out_ref   : (1, TH, W, Cout)    output row tile
    """
    r = pl.program_id(1)
    row0 = pl.multiple_of(r * TH, TH)
    cin = dw_ref.shape[-1]

    # --- depthwise 3x3 conv: 9 shifted taps, elementwise MAC on the VPU -----
    # Taps are loaded straight from the ref so only one (TH, W, Cin) f32
    # accumulator is live in vregs.
    acc = jnp.zeros((TH, W, cin), jnp.float32)
    for dy in range(3):
        for dx in range(3):
            tap = x_ref[0, pl.ds(row0 + dy, TH), dx:dx + W, :]
            w = dw_ref[dy, dx, :].astype(jnp.float32)              # (Cin,)
            acc = acc + tap.astype(jnp.float32) * w

    # --- pointwise 1x1 conv == channel matmul on the MXU --------------------
    lhs = acc.reshape(TH * W, cin).astype(mxu_dtype)
    y = jax.lax.dot_general(
        lhs, pw_ref[...],
        dimension_numbers=(((1,), (0,)), ((), ())),
        preferred_element_type=jnp.float32)                        # (TH*W, Cout)

    # --- folded pointwise bias + BatchNorm (scale already inside pw_ref) ----
    y = y + shift_ref[0, :]

    # --- optional swish ------------------------------------------------------
    if apply_swish:
        y = y * jax.nn.sigmoid(y)

    out_ref[0] = y.reshape(TH, W, -1).astype(out_ref.dtype)


def _pick_row_tile(H, W, C, Cout, budget_bytes=2 << 20):
    """Largest divisor TH of H whose f32 accumulator fits the budget."""
    best = 1
    for th in range(1, H + 1):
        if H % th == 0 and th * W * max(C, Cout) * 4 <= budget_bytes:
            best = th
    return best


def separable_conv_block(x_nchw, dw_w, pw_w, pw_b,
                         bn_gamma, bn_beta, bn_mean, bn_var,
                         *, eps=1e-3, norm=True, activation=False,
                         row_tile=None):
    """Pallas implementation of SeparableConvBlock.forward.

    x_nchw : (N, Cin, H, W)      float32, NCHW (PyTorch convention)
    dw_w   : (3, 3, Cin)         depthwise conv weights (per-channel 3x3)
    pw_w   : (Cin, Cout)         pointwise conv weights
    pw_b   : (Cout,)             pointwise conv bias
    bn_*   : (Cout,)             BatchNorm parameters / running stats
    returns: (N, Cout, H, W)
    """
    N, C, H, W = x_nchw.shape
    Cout = pw_w.shape[-1]

    if row_tile is None:
        row_tile = _pick_row_tile(H, W, C, Cout)
    TH = int(row_tile)
    assert H % TH == 0, "row_tile must divide H"
    R = H // TH

    # TODO(synk): the NCHW<->NHWC transposes and the SAME-pad copy are extra
    # HBM passes; a production integration should keep activations NHWC
    # end-to-end and fuse the halo into the producer.
    x = jnp.transpose(x_nchw, (0, 2, 3, 1))                 # NHWC
    xp = jnp.pad(x, ((0, 0), (1, 1), (1, 1), (0, 0)))       # SAME pad, k=3 s=1

    # Fold BN (inference mode) and the pointwise bias:
    #   y = (acc @ pw + b) * scale + (beta - mean*scale)
    #     =  acc @ (pw * scale) + (b*scale + beta - mean*scale)
    if norm:
        inv_std = 1.0 / jnp.sqrt(bn_var.astype(jnp.float32) + eps)
        scale = bn_gamma.astype(jnp.float32) * inv_std
        shift = (pw_b.astype(jnp.float32) * scale
                 + bn_beta.astype(jnp.float32)
                 - bn_mean.astype(jnp.float32) * scale)
    else:
        scale = jnp.ones((Cout,), jnp.float32)
        shift = pw_b.astype(jnp.float32)

    # bf16 MXU operands only when the contraction is production sized
    # (doubles MXU throughput on v6e/v7x; accumulation stays f32).
    mxu_dtype = jnp.bfloat16 if (C >= 128 and Cout >= 128) else jnp.float32
    pw_folded = (pw_w.astype(jnp.float32) * scale[None, :]).astype(mxu_dtype)
    shift2 = shift.reshape(1, Cout)

    # TODO(synk): with Cout < 128 (toy test shapes) stores are lane-masked;
    # production channel counts (>=128) make the channel/lane dim dense.

    kern = functools.partial(_sep_conv_kernel, TH=TH, W=W,
                             apply_swish=activation, mxu_dtype=mxu_dtype)

    # VMEM budget: double-buffered padded input + output tile + weights.
    in_block = (H + 2) * (W + 2) * C * x.dtype.itemsize
    out_block = TH * W * Cout * x.dtype.itemsize
    wgt = 9 * C * 4 + C * Cout * jnp.dtype(mxu_dtype).itemsize + Cout * 4
    est = 2 * (in_block + out_block) + wgt + (4 << 20)
    vmem_limit = int(min(max(est, 32 << 20), 64 << 20))

    out_nhwc = pl.pallas_call(
        kern,
        out_shape=jax.ShapeDtypeStruct((N, H, W, Cout), x.dtype),
        grid=(N, R),
        in_specs=[
            # Full padded image per batch element; block index is constant
            # along the row-tile axis so it stays VMEM-resident across r.
            pl.BlockSpec((1, H + 2, W + 2, C), lambda n, r: (n, 0, 0, 0)),
            pl.BlockSpec((3, 3, C), lambda n, r: (0, 0, 0)),
            pl.BlockSpec((C, Cout), lambda n, r: (0, 0)),
            pl.BlockSpec((1, Cout), lambda n, r: (0, 0)),
        ],
        out_specs=pl.BlockSpec((1, TH, W, Cout), lambda n, r: (n, r, 0, 0)),
        compiler_params=pltpu.CompilerParams(
            dimension_semantics=("parallel", "parallel"),
            vmem_limit_bytes=vmem_limit),
    )(xp, dw_w, pw_folded, shift2)

    return jnp.transpose(out_nhwc, (0, 3, 1, 2))             # back to NCHW


def _reference_forward(x_nchw, dw_w, pw_w, pw_b, gamma, beta, mean, var,
                       *, eps=1e-3, norm=True, activation=False):
    """Pure-JAX reference matching the PyTorch module (inference-mode BN)."""
    C = x_nchw.shape[1]
    dw = jnp.transpose(dw_w, (2, 0, 1))[:, None, :, :]        # (C, 1, 3, 3)
    y = jax.lax.conv_general_dilated(
        x_nchw, dw, window_strides=(1, 1), padding=((1, 1), (1, 1)),
        dimension_numbers=("NCHW", "OIHW", "NCHW"), feature_group_count=C)
    pw = jnp.transpose(pw_w, (1, 0))[:, :, None, None]        # (Cout, Cin, 1, 1)
    y = jax.lax.conv_general_dilated(
        y, pw, window_strides=(1, 1), padding=((0, 0), (0, 0)),
        dimension_numbers=("NCHW", "OIHW", "NCHW"))
    y = y + pw_b[None, :, None, None]
    if norm:
        y = (y - mean[None, :, None, None]) / jnp.sqrt(
            var[None, :, None, None] + eps)
        y = y * gamma[None, :, None, None] + beta[None, :, None, None]
    if activation:
        y = y * jax.nn.sigmoid(y)
    return y


if __name__ == "__main__":
    key = jax.random.PRNGKey(0)
    k_x, k_dw, k_pw, k_pb = jax.random.split(key, 4)

    N, Cin, H, W = 2, 4, 16, 16
    Cout = Cin  # out_channels defaults to in_channels

    x = jax.random.normal(k_x, (N, Cin, H, W), jnp.float32)

    # Deterministic parameter init (shapes from the module's __init__).
    dw_w = 0.1 * jax.random.normal(k_dw, (3, 3, Cin), jnp.float32)   # depthwise
    pw_w = 0.1 * jax.random.normal(k_pw, (Cin, Cout), jnp.float32)   # pointwise
    pw_b = 0.1 * jax.random.normal(k_pb, (Cout,), jnp.float32)
    bn_gamma = jnp.ones((Cout,), jnp.float32)    # PyTorch BatchNorm2d defaults
    bn_beta = jnp.zeros((Cout,), jnp.float32)
    bn_mean = jnp.zeros((Cout,), jnp.float32)
    bn_var = jnp.ones((Cout,), jnp.float32)

    # row_tile=8 -> grid=(2, 2): exercises the row-tiled path explicitly.
    for act in (False, True):
        out = separable_conv_block(
            x, dw_w, pw_w, pw_b, bn_gamma, bn_beta, bn_mean, bn_var,
            eps=1e-3, norm=True, activation=act, row_tile=8)
        out = jax.block_until_ready(out)

        ref = _reference_forward(
            x, dw_w, pw_w, pw_b, bn_gamma, bn_beta, bn_mean, bn_var,
            eps=1e-3, norm=True, activation=act)

        assert out.shape == (N, Cout, H, W)
        err = float(jnp.max(jnp.abs(out - ref)))
        assert err < 1e-4, f"mismatch vs reference (activation={act}): {err}"

    print("KERNEL_OK")
</pallas_src>

<mosaic_0001>
module attributes {stable_mosaic.version = 11 : i64} {
  func.func @_sep_conv_kernel(%arg0: i32, %arg1: i32, %arg2: memref<1x18x18x4xf32, #tpu.memory_space<vmem>>, %arg3: memref<3x3x4xf32, #tpu.memory_space<vmem>>, %arg4: memref<4x4xf32, #tpu.memory_space<vmem>>, %arg5: memref<1x4xf32, #tpu.memory_space<vmem>>, %arg6: memref<1x8x16x4xf32, #tpu.memory_space<vmem>>) attributes {dimension_semantics = [#tpu.dimension_semantics<parallel>, #tpu.dimension_semantics<parallel>], iteration_bounds = array<i64: 2, 2>, scalar_prefetch = 0 : i64, scratch_operands = 0 : i64, tpu.core_type = #tpu.core_type<tc>, window_params = [{transform_indices = @transform_0, window_bounds = array<i64: 1, 18, 18, 4>}, {pipeline_mode = #tpu.pipeline_mode<synchronous>, transform_indices = @transform_1, window_bounds = array<i64: 3, 3, 4>}, {pipeline_mode = #tpu.pipeline_mode<synchronous>, transform_indices = @transform_2, window_bounds = array<i64: 4, 4>}, {pipeline_mode = #tpu.pipeline_mode<synchronous>, transform_indices = @transform_3, window_bounds = array<i64: 1, 4>}, {transform_indices = @transform_4, window_bounds = array<i64: 1, 8, 16, 4>}]} {
    %c8_i32 = arith.constant 8 : i32
    %0 = arith.muli %arg1, %c8_i32 : i32
    %1 = tpu.assume_multiple %0, 8 : i32
    %cst = arith.constant 0.000000e+00 : f32
    %2 = vector.broadcast %cst : f32 to vector<8x16x4xf32>
    %c0_i32 = arith.constant 0 : i32
    %3 = arith.addi %1, %c0_i32 : i32
    %c0 = arith.constant 0 : index
    %4 = arith.index_cast %3 : i32 to index
    %c0_0 = arith.constant 0 : index
    %c0_1 = arith.constant 0 : index
    %5 = vector.load %arg2[%c0, %4, %c0_0, %c0_1] : memref<1x18x18x4xf32, #tpu.memory_space<vmem>>, vector<1x8x16x4xf32>
    %6 = vector.shape_cast %5 : vector<1x8x16x4xf32> to vector<8x16x4xf32>
    %c0_2 = arith.constant 0 : index
    %c0_3 = arith.constant 0 : index
    %c0_4 = arith.constant 0 : index
    %7 = vector.load %arg3[%c0_2, %c0_3, %c0_4] : memref<3x3x4xf32, #tpu.memory_space<vmem>>, vector<1x1x4xf32>
    %8 = vector.shape_cast %7 : vector<1x1x4xf32> to vector<4xf32>
    %9 = vector.shape_cast %8 : vector<4xf32> to vector<1x1x4xf32>
    %10 = vector.broadcast %9 : vector<1x1x4xf32> to vector<8x16x4xf32>
    %11 = arith.mulf %6, %10 : vector<8x16x4xf32>
    %12 = arith.addf %2, %11 : vector<8x16x4xf32>
    %c0_i32_5 = arith.constant 0 : i32
    %13 = arith.addi %1, %c0_i32_5 : i32
    %c0_6 = arith.constant 0 : index
    %14 = arith.index_cast %13 : i32 to index
    %c1 = arith.constant 1 : index
    %c0_7 = arith.constant 0 : index
    %15 = vector.load %arg2[%c0_6, %14, %c1, %c0_7] : memref<1x18x18x4xf32, #tpu.memory_space<vmem>>, vector<1x8x16x4xf32>
    %16 = vector.shape_cast %15 : vector<1x8x16x4xf32> to vector<8x16x4xf32>
    %c0_8 = arith.constant 0 : index
    %c1_9 = arith.constant 1 : index
    %c0_10 = arith.constant 0 : index
    %17 = vector.load %arg3[%c0_8, %c1_9, %c0_10] : memref<3x3x4xf32, #tpu.memory_space<vmem>>, vector<1x1x4xf32>
    %18 = vector.shape_cast %17 : vector<1x1x4xf32> to vector<4xf32>
    %19 = vector.shape_cast %18 : vector<4xf32> to vector<1x1x4xf32>
    %20 = vector.broadcast %19 : vector<1x1x4xf32> to vector<8x16x4xf32>
    %21 = arith.mulf %16, %20 : vector<8x16x4xf32>
    %22 = arith.addf %12, %21 : vector<8x16x4xf32>
    %c0_i32_11 = arith.constant 0 : i32
    %23 = arith.addi %1, %c0_i32_11 : i32
    %c0_12 = arith.constant 0 : index
    %24 = arith.index_cast %23 : i32 to index
    %c2 = arith.constant 2 : index
    %c0_13 = arith.constant 0 : index
    %25 = vector.load %arg2[%c0_12, %24, %c2, %c0_13] : memref<1x18x18x4xf32, #tpu.memory_space<vmem>>, vector<1x8x16x4xf32>
    %26 = vector.shape_cast %25 : vector<1x8x16x4xf32> to vector<8x16x4xf32>
    %c0_14 = arith.constant 0 : index
    %c2_15 = arith.constant 2 : index
    %c0_16 = arith.constant 0 : index
    %27 = vector.load %arg3[%c0_14, %c2_15, %c0_16] : memref<3x3x4xf32, #tpu.memory_space<vmem>>, vector<1x1x4xf32>
    %28 = vector.shape_cast %27 : vector<1x1x4xf32> to vector<4xf32>
    %29 = vector.shape_cast %28 : vector<4xf32> to vector<1x1x4xf32>
    %30 = vector.broadcast %29 : vector<1x1x4xf32> to vector<8x16x4xf32>
    %31 = arith.mulf %26, %30 : vector<8x16x4xf32>
    %32 = arith.addf %22, %31 : vector<8x16x4xf32>
    %c1_i32 = arith.constant 1 : i32
    %33 = arith.addi %1, %c1_i32 : i32
    %c0_17 = arith.constant 0 : index
    %34 = arith.index_cast %33 : i32 to index
    %c0_18 = arith.constant 0 : index
    %c0_19 = arith.constant 0 : index
    %35 = vector.load %arg2[%c0_17, %34, %c0_18, %c0_19] : memref<1x18x18x4xf32, #tpu.memory_space<vmem>>, vector<1x8x16x4xf32>
    %36 = vector.shape_cast %35 : vector<1x8x16x4xf32> to vector<8x16x4xf32>
    %c1_20 = arith.constant 1 : index
    %c0_21 = arith.constant 0 : index
    %c0_22 = arith.constant 0 : index
    %37 = vector.load %arg3[%c1_20, %c0_21, %c0_22] : memref<3x3x4xf32, #tpu.memory_space<vmem>>, vector<1x1x4xf32>
    %38 = vector.shape_cast %37 : vector<1x1x4xf32> to vector<4xf32>
    %39 = vector.shape_cast %38 : vector<4xf32> to vector<1x1x4xf32>
    %40 = vector.broadcast %39 : vector<1x1x4xf32> to vector<8x16x4xf32>
    %41 = arith.mulf %36, %40 : vector<8x16x4xf32>
    %42 = arith.addf %32, %41 : vector<8x16x4xf32>
    %c1_i32_23 = arith.constant 1 : i32
    %43 = arith.addi %1, %c1_i32_23 : i32
    %c0_24 = arith.constant 0 : index
    %44 = arith.index_cast %43 : i32 to index
    %c1_25 = arith.constant 1 : index
    %c0_26 = arith.constant 0 : index
    %45 = vector.load %arg2[%c0_24, %44, %c1_25, %c0_26] : memref<1x18x18x4xf32, #tpu.memory_space<vmem>>, vector<1x8x16x4xf32>
    %46 = vector.shape_cast %45 : vector<1x8x16x4xf32> to vector<8x16x4xf32>
    %c1_27 = arith.constant 1 : index
    %c1_28 = arith.constant 1 : index
    %c0_29 = arith.constant 0 : index
    %47 = vector.load %arg3[%c1_27, %c1_28, %c0_29] : memref<3x3x4xf32, #tpu.memory_space<vmem>>, vector<1x1x4xf32>
    %48 = vector.shape_cast %47 : vector<1x1x4xf32> to vector<4xf32>
    %49 = vector.shape_cast %48 : vector<4xf32> to vector<1x1x4xf32>
    %50 = vector.broadcast %49 : vector<1x1x4xf32> to vector<8x16x4xf32>
    %51 = arith.mulf %46, %50 : vector<8x16x4xf32>
    %52 = arith.addf %42, %51 : vector<8x16x4xf32>
    %c1_i32_30 = arith.constant 1 : i32
    %53 = arith.addi %1, %c1_i32_30 : i32
    %c0_31 = arith.constant 0 : index
    %54 = arith.index_cast %53 : i32 to index
    %c2_32 = arith.constant 2 : index
    %c0_33 = arith.constant 0 : index
    %55 = vector.load %arg2[%c0_31, %54, %c2_32, %c0_33] : memref<1x18x18x4xf32, #tpu.memory_space<vmem>>, vector<1x8x16x4xf32>
    %56 = vector.shape_cast %55 : vector<1x8x16x4xf32> to vector<8x16x4xf32>
    %c1_34 = arith.constant 1 : index
    %c2_35 = arith.constant 2 : index
    %c0_36 = arith.constant 0 : index
    %57 = vector.load %arg3[%c1_34, %c2_35, %c0_36] : memref<3x3x4xf32, #tpu.memory_space<vmem>>, vector<1x1x4xf32>
    %58 = vector.shape_cast %57 : vector<1x1x4xf32> to vector<4xf32>
    %59 = vector.shape_cast %58 : vector<4xf32> to vector<1x1x4xf32>
    %60 = vector.broadcast %59 : vector<1x1x4xf32> to vector<8x16x4xf32>
    %61 = arith.mulf %56, %60 : vector<8x16x4xf32>
    %62 = arith.addf %52, %61 : vector<8x16x4xf32>
    %c2_i32 = arith.constant 2 : i32
    %63 = arith.addi %1, %c2_i32 : i32
    %c0_37 = arith.constant 0 : index
    %64 = arith.index_cast %63 : i32 to index
    %c0_38 = arith.constant 0 : index
    %c0_39 = arith.constant 0 : index
    %65 = vector.load %arg2[%c0_37, %64, %c0_38, %c0_39] : memref<1x18x18x4xf32, #tpu.memory_space<vmem>>, vector<1x8x16x4xf32>
    %66 = vector.shape_cast %65 : vector<1x8x16x4xf32> to vector<8x16x4xf32>
    %c2_40 = arith.constant 2 : index
    %c0_41 = arith.constant 0 : index
    %c0_42 = arith.constant 0 : index
    %67 = vector.load %arg3[%c2_40, %c0_41, %c0_42] : memref<3x3x4xf32, #tpu.memory_space<vmem>>, vector<1x1x4xf32>
    %68 = vector.shape_cast %67 : vector<1x1x4xf32> to vector<4xf32>
    %69 = vector.shape_cast %68 : vector<4xf32> to vector<1x1x4xf32>
    %70 = vector.broadcast %69 : vector<1x1x4xf32> to vector<8x16x4xf32>
    %71 = arith.mulf %66, %70 : vector<8x16x4xf32>
    %72 = arith.addf %62, %71 : vector<8x16x4xf32>
    %c2_i32_43 = arith.constant 2 : i32
    %73 = arith.addi %1, %c2_i32_43 : i32
    %c0_44 = arith.constant 0 : index
    %74 = arith.index_cast %73 : i32 to index
    %c1_45 = arith.constant 1 : index
    %c0_46 = arith.constant 0 : index
    %75 = vector.load %arg2[%c0_44, %74, %c1_45, %c0_46] : memref<1x18x18x4xf32, #tpu.memory_space<vmem>>, vector<1x8x16x4xf32>
    %76 = vector.shape_cast %75 : vector<1x8x16x4xf32> to vector<8x16x4xf32>
    %c2_47 = arith.constant 2 : index
    %c1_48 = arith.constant 1 : index
    %c0_49 = arith.constant 0 : index
    %77 = vector.load %arg3[%c2_47, %c1_48, %c0_49] : memref<3x3x4xf32, #tpu.memory_space<vmem>>, vector<1x1x4xf32>
    %78 = vector.shape_cast %77 : vector<1x1x4xf32> to vector<4xf32>
    %79 = vector.shape_cast %78 : vector<4xf32> to vector<1x1x4xf32>
    %80 = vector.broadcast %79 : vector<1x1x4xf32> to vector<8x16x4xf32>
    %81 = arith.mulf %76, %80 : vector<8x16x4xf32>
    %82 = arith.addf %72, %81 : vector<8x16x4xf32>
    %c2_i32_50 = arith.constant 2 : i32
    %83 = arith.addi %1, %c2_i32_50 : i32
    %c0_51 = arith.constant 0 : index
    %84 = arith.index_cast %83 : i32 to index
    %c2_52 = arith.constant 2 : index
    %c0_53 = arith.constant 0 : index
    %85 = vector.load %arg2[%c0_51, %84, %c2_52, %c0_53] : memref<1x18x18x4xf32, #tpu.memory_space<vmem>>, vector<1x8x16x4xf32>
    %86 = vector.shape_cast %85 : vector<1x8x16x4xf32> to vector<8x16x4xf32>
    %c2_54 = arith.constant 2 : index
    %c2_55 = arith.constant 2 : index
    %c0_56 = arith.constant 0 : index
    %87 = vector.load %arg3[%c2_54, %c2_55, %c0_56] : memref<3x3x4xf32, #tpu.memory_space<vmem>>, vector<1x1x4xf32>
    %88 = vector.shape_cast %87 : vector<1x1x4xf32> to vector<4xf32>
    %89 = vector.shape_cast %88 : vector<4xf32> to vector<1x1x4xf32>
    %90 = vector.broadcast %89 : vector<1x1x4xf32> to vector<8x16x4xf32>
    %91 = arith.mulf %86, %90 : vector<8x16x4xf32>
    %92 = arith.addf %82, %91 : vector<8x16x4xf32>
    %93 = vector.shape_cast %92 : vector<8x16x4xf32> to vector<128x4xf32>
    %c0_57 = arith.constant 0 : index
    %c0_58 = arith.constant 0 : index
    %94 = vector.load %arg4[%c0_57, %c0_58] : memref<4x4xf32, #tpu.memory_space<vmem>>, vector<4x4xf32>
    %cst_59 = arith.constant dense<0.000000e+00> : vector<128x4xf32>
    %95 = tpu.matmul %93, %94, %cst_59 {dimension_numbers = #tpu.dot_dimension_numbers<[1], [0], [0], [1], [0, 0, 1, 1], [], []>} : vector<128x4xf32>, vector<4x4xf32>, vector<128x4xf32> -> vector<128x4xf32>
    %c0_60 = arith.constant 0 : index
    %c0_61 = arith.constant 0 : index
    %96 = vector.load %arg5[%c0_60, %c0_61] : memref<1x4xf32, #tpu.memory_space<vmem>>, vector<1x4xf32>
    %97 = vector.shape_cast %96 : vector<1x4xf32> to vector<4xf32>
    %98 = vector.shape_cast %97 : vector<4xf32> to vector<1x4xf32>
    %99 = vector.broadcast %98 : vector<1x4xf32> to vector<128x4xf32>
    %100 = arith.addf %95, %99 : vector<128x4xf32>
    %101 = vector.shape_cast %100 : vector<128x4xf32> to vector<8x16x4xf32>
    %c0_62 = arith.constant 0 : index
    %c0_63 = arith.constant 0 : index
    %c0_64 = arith.constant 0 : index
    %c0_65 = arith.constant 0 : index
    %102 = vector.load %arg6[%c0_62, %c0_63, %c0_64, %c0_65] : memref<1x8x16x4xf32, #tpu.memory_space<vmem>>, vector<1x8x16x4xf32>
    %103 = vector.shape_cast %102 : vector<1x8x16x4xf32> to vector<8x16x4xf32>
    %104 = vector.shape_cast %101 : vector<8x16x4xf32> to vector<1x8x16x4xf32>
    tpu.vector_store %arg6[%c0_62, %c0_63, %c0_64, %c0_65], %104 {strides = array<i32>} : memref<1x8x16x4xf32, #tpu.memory_space<vmem>>, vector<1x8x16x4xf32>,
    return
  }
  func.func @transform_0(%arg0: i32, %arg1: i32) -> (i32, i32, i32, i32) {
    %c0_i32 = arith.constant 0 : i32
    %c0_i32_0 = arith.constant 0 : i32
    %c0_i32_1 = arith.constant 0 : i32
    %c0_i32_2 = arith.constant 0 : i32
    return %arg0, %c0_i32, %c0_i32_0, %c0_i32_1 : i32, i32, i32, i32
  }
  func.func @transform_1(%arg0: i32, %arg1: i32) -> (i32, i32, i32) {
    %c0_i32 = arith.constant 0 : i32
    %c0_i32_0 = arith.constant 0 : i32
    %c0_i32_1 = arith.constant 0 : i32
    %c0_i32_2 = arith.constant 0 : i32
    return %c0_i32, %c0_i32_0, %c0_i32_1 : i32, i32, i32
  }
  func.func @transform_2(%arg0: i32, %arg1: i32) -> (i32, i32) {
    %c0_i32 = arith.constant 0 : i32
    %c0_i32_0 = arith.constant 0 : i32
    %c0_i32_1 = arith.constant 0 : i32
    return %c0_i32, %c0_i32_0 : i32, i32
  }
  func.func @transform_3(%arg0: i32, %arg1: i32) -> (i32, i32) {
    %c0_i32 = arith.constant 0 : i32
    %c0_i32_0 = arith.constant 0 : i32
    %c0_i32_1 = arith.constant 0 : i32
    return %c0_i32, %c0_i32_0 : i32, i32
  }
  func.func @transform_4(%arg0: i32, %arg1: i32) -> (i32, i32, i32, i32) {
    %c0_i32 = arith.constant 0 : i32
    %c0_i32_0 = arith.constant 0 : i32
    %c0_i32_1 = arith.constant 0 : i32
    return %arg0, %arg1, %c0_i32, %c0_i32_0 : i32, i32, i32, i32
  }
}

</mosaic_0001>

<bundles_post_ra>
// kernel: tpu_custom_call.1
= control target key start
LH: loop header
LB: loop body
LE: loop exit
PB: predicated region body
PF: predicated region fallthrough
CT: control target
= control target key end

     0   :  { %s1331_s15 = smov 0   ;;  %s1333_s16 = smov 0   ;;  %s1900_s0 = inlined_call_operand.vmem [shape: f32[2,18,18,4], index: 0, kind: input, shape index: {}]   ;;  %s1901_s1 = inlined_call_operand.vmem [shape: f32[3,3,4], index: 1, kind: input, shape index: {}]   ;;  %s1902_s2 = inlined_call_operand.vmem [shape: f32[4,4], index: 2, kind: input, shape index: {}]   ;;  %s1903_s3 = inlined_call_operand.vmem [shape: f32[1,4], index: 3, kind: input, shape index: {}]   ;;  %s1904_s4 = inlined_call_operand.vmem [shape: f32[2,16,16,4], index: 4, kind: output, shape index: {}]  }
   0x1   :  { %s1335_s17 = smov 0   ;;  %s1337_s18 = smov 0  }
   0x2   :  { %s1339_s19 = smov 0  }
   0x3 LB: > { %s23_s20 = sadd.s32 1, %s1296_s17  ;;  %s26_s21 = sadd.s32 1, %s1300_s18  ;;  %s1304_s19 = sphi %s1339_s19, %s14_s19   ;;  %s1300_s18 = sphi %s1337_s18, %s1908_s18   ;;  %s1296_s17 = sphi %s1335_s17, %s1907_s17   ;;  %s1292_s16 = sphi %s1333_s16, %s1906_s16   ;;  %s1288_s15 = sphi %s1331_s15, %s1905_s15  }
   0x4   : > { %p24_p0 = scmp.ge.s32.totalorder %s23_s20, 2  ;;  %p1037_p1 = scmp.ge.s32.totalorder %s1304_s19, 1 }
   0x5   : > { %p176_p2 = scmp.lt.s32.totalorder %s1304_s19, 5 }
   0x6   : > { %s1910_s20 = smov (%p24_p0, %s23_s20), 0  ;;  %s1912_s21 = smov (!%p24_p0, %s26_s21), %s1300_s18 }
   0x7   : > { %p177_p3 = pnand %p1037_p1, %p176_p2  ;;  %p28_p4 = scmp.ge.s32.totalorder %s1912_s21, 2 }
   0x8   : > { %p207_p5 = scmp.lt.s32.totalorder (!%p177_p3), %s1292_s16, 1  ;;  %s1044_s24 = smul.u32 (!%p177_p3), 192, %s1288_s15 }
   0x9   : > { %s1914_s21 = smov (%p28_p4, %s1912_s21), 0  ;;  %180 = sbr.rel (%p177_p3) target bundleno = 295 (0x127), region = 36 }
   0xa   : > { %s1039_s29 = sshll.u32 (!%p177_p3), %s1288_s15, 3 }
   0xb   : > { %p215_p6 = scmp.lt.s32.totalorder (!%p177_p3), %s1039_s29, 15 }
   0xe   : > { %v711_v0 = vld [vmem:[%s1902_s2] sm:$0xf]  ;;  %vm768_vm0 = vcmask 1043456   ;;  %s1916_s16 = smov (!%p207_p5, %s1292_s16), 1  ;;  %v1393_v4 = vld [vmem:[%s1901_s1 + $0x4] ss:$0 sm:$0xff] }
   0xf   : > { %1197 = vmatprep.subr.msk.mxu0 %vm768_vm0, %v711_v0  ;;  %1223 = vmatprep.subr.msk.mxu1 %vm768_vm0, %v711_v0  ;;  %s1225_s25 = smul.u32 432, %s1916_s16  ;;  %v1376_v1 = vld [vmem:[%s1901_s1] ss:$0 sm:$0xff]  ;;  %v1381_v2 = vld [vmem:[%s1901_s1 + $0x1] ss:$0 sm:$0xff]  ;;  %vm719_vm1 = vcmask 31744  }
  0x10   : > { %1198 = vmatpush3.msk.msra.mxu0 %vm768_vm0, %v711_v0  ;;  %1224 = vmatpush3.msk.msra.mxu1 %vm768_vm0, %v711_v0  ;;  %v1386_v3 = vld [vmem:[%s1901_s1 + $0x2] ss:$0 sm:$0xff]  ;;  %v1398_v5 = vld [vmem:[%s1901_s1 + $0x5] ss:$0 sm:$0xff]  ;;  %v1403_v6 = vld [vmem:[%s1901_s1 + $0x6] ss:$0 sm:$0xff] }
  0x11   : > { %s211_s28 = scalar_lea.vmem %s1900_s0, %s1225_s25  ;;  %v1411_v10 = vld [vmem:[%s1901_s1 + $0x8] ss:$0 sm:$0xff]  ;;  %v1420_v15 = vld [vmem:[%s1901_s1 + $0x9] ss:$0 sm:$0xff]  ;;  %v1425_v16 = vld [vmem:[%s1901_s1 + $0xa] ss:$0 sm:$0xff] }
  0x12   : > { %s1388_s9 = scalar_lea.vmem %s211_s28, %s1044_s24  ;;  %s1918_s29 = smov (!%p215_p6, %s1039_s29), 15 }
  0x13   : > { %v226_v7 = vld [vmem:[%s1388_s9] sm:$0xff]  ;;  %v1050_v14 = vld [vmem:[%s1388_s9 + $0x18] sm:$0xff]  ;;  %v1432_v19 = vld [vmem:[%s1388_s9 + $0x30] sm:$0xff]  ;;  %s1040_s30 = sshll.u32 %s1918_s29, 1  ;;  %s1041_s5 = sshll.u32 %s1916_s16, 5 }
  0x14   : > { %v279_v8 = vld [vmem:[%s1388_s9 + $0x1] sm:$0xff]  ;;  %v247_v11 = vmul.f32 %v1376_v1, %v226_v7  ;;  %v1068_v17 = vld [vmem:[%s1388_s9 + $0x19] sm:$0xff]  ;;  %v410_v21 = vmul.f32 %v1393_v4, %v1050_v14  ;;  %v1448_v27 = vld [vmem:[%s1388_s9 + $0x31] sm:$0xff]  ;;  %v249_v33 = vmul.f32 %v1050_v14, %v1376_v1  ;;  %v573_v35 = vmul.f32 %v1411_v10, %v1432_v19  ;;  %s219_s6 = sadd.s32 %s1041_s5, %s1040_s30 }
  0x15   : > { %v332_v9 = vld [vmem:[%s1388_s9 + $0x2] sm:$0xff]  ;;  %v300_v12 = vmul.f32 %v1381_v2, %v279_v8  ;;  %v1429_v18 = vld [vmem:[%s1388_s9 + $0x1a] sm:$0xff]  ;;  %v463_v22 = vmul.f32 %v1398_v5, %v1068_v17  ;;  %v1451_v28 = vld [vmem:[%s1388_s9 + $0x32] sm:$0xff]  ;;  %v626_v36 = vmul.f32 %v1420_v15, %v1448_v27  ;;  %v302_v46 = vmul.f32 %v1068_v17, %v1381_v2  ;;  %s1042_s7 = sshll.u32 %s219_s6, 3 }
  0x16   : > { %v353_v13 = vmul.f32 %v1386_v3, %v332_v9  ;;  %v516_v23 = vmul.f32 %v1403_v6, %v1429_v18  ;;  %v1439_v24 = vld [vmem:[%s1388_s9 + $0x60] sm:$0xff]  ;;  %v1460_v32 = vld [vmem:[%s1388_s9 + $0x78] sm:$0xff]  ;;  %v1469_v37 = vmul.f32 %v1425_v16, %v1451_v28  ;;  %v227_v43 = vld [vmem:[%s1388_s9 + $0x8] sm:$0xff]  ;;  %s1851_s12 = scalar_lea.vmem %s1904_s4, %s1042_s7 }
  0x17   : > { %v316_v20 = vadd.f32 %v300_v12, %v247_v11  ;;  %v1442_v25 = vld [vmem:[%s1388_s9 + $0x61] sm:$0xff]  ;;  %v255_v29 = vmul.f32 %v1376_v1, %v1439_v24  ;;  %v1472_v38 = vld [vmem:[%s1388_s9 + $0x79] sm:$0xff]  ;;  %v418_v41 = vmul.f32 %v1393_v4, %v1460_v32  ;;  %v280_v44 = vld [vmem:[%s1388_s9 + $0x9] sm:$0xff]  ;;  %v248_v50 = vmul.f32 %v1376_v1, %v227_v43 }
  0x18   : > { %v1445_v26 = vld [vmem:[%s1388_s9 + $0x62] sm:$0xff]  ;;  %v308_v30 = vmul.f32 %v1381_v2, %v1442_v25  ;;  %v1475_v39 = vld [vmem:[%s1388_s9 + $0x7a] sm:$0xff]  ;;  %v471_v42 = vmul.f32 %v1398_v5, %v1472_v38  ;;  %v333_v45 = vld [vmem:[%s1388_s9 + $0xa] sm:$0xff]  ;;  %v301_v51 = vmul.f32 %v1381_v2, %v280_v44 }
  0x19   : > { %v361_v31 = vmul.f32 %v1386_v3, %v1445_v26  ;;  %v369_v34 = vadd.f32 %v353_v13, %v316_v20  ;;  %v1486_v48 = vld [vmem:[%s1388_s9 + $0x90] sm:$0xff]  ;;  %v354_v52 = vmul.f32 %v1386_v3, %v333_v45  ;;  %v1495_v53 = vld [vmem:[%s1388_s9 + $0x20] sm:$0xff]  ;;  %v524_v55 = vmul.f32 %v1403_v6, %v1475_v39  ;;  %v1514_v0 = vld [vmem:[%s1388_s9 + $0x68] sm:$0xff] }
  0x1a   : > { %v324_v40 = vadd.f32 %v308_v30, %v255_v29  ;;  %v1489_v49 = vld [vmem:[%s1388_s9 + $0x91] sm:$0xff]  ;;  %v581_v56 = vmul.f32 %v1411_v10, %v1486_v48  ;;  %v1507_v59 = vld [vmem:[%s1388_s9 + $0x21] sm:$0xff]  ;;  %v317_v62 = vadd.f32 %v301_v51, %v248_v50  ;;  %v411_v63 = vmul.f32 %v1393_v4, %v1495_v53  ;;  %v1517_v7 = vld [vmem:[%s1388_s9 + $0x69] sm:$0xff] }
  0x1b   : > { %v426_v47 = vadd.f32 %v410_v21, %v369_v34  ;;  %v634_v57 = vmul.f32 %v1420_v15, %v1489_v49  ;;  %v1504_v58 = vld [vmem:[%s1388_s9 + $0x92] sm:$0xff]  ;;  %v1520_v8 = vld [vmem:[%s1388_s9 + $0x6a] sm:$0xff]  ;;  %v464_v11 = vmul.f32 %v1398_v5, %v1507_v59  ;;  %v1525_v12 = vld [vmem:[%s1388_s9 + $0x22] sm:$0xff]  ;;  %v256_v13 = vmul.f32 %v1376_v1, %v1514_v0 }
  0x1c   : > { %v377_v54 = vadd.f32 %v361_v31, %v324_v40  ;;  %v687_v61 = vmul.f32 %v1425_v16, %v1504_v58  ;;  %v309_v14 = vmul.f32 %v1381_v2, %v1517_v7  ;;  %v1532_v17 = vld [vmem:[%s1388_s9 + $0x80] sm:$0xff]  ;;  %v370_v21 = vadd.f32 %v354_v52, %v317_v62  ;;  %v1537_v29 = vld [vmem:[%s1388_s9 + $0x38] sm:$0xff] }
  0x1d   : > { %v479_v60 = vadd.f32 %v463_v22, %v426_v47  ;;  %v517_v22 = vmul.f32 %v1403_v6, %v1525_v12  ;;  %v362_v30 = vmul.f32 %v1386_v3, %v1520_v8  ;;  %v574_v34 = vmul.f32 %v1411_v10, %v1537_v29  ;;  %v1544_v40 = vld [vmem:[%s1388_s9 + $0x39] sm:$0xff]  ;;  %v1556_v50 = vld [vmem:[%s1388_s9 + $0x81] sm:$0xff] }
  0x1e   : > { %v434_v9 = vadd.f32 %v418_v41, %v377_v54  ;;  %v1547_v41 = vld [vmem:[%s1388_s9 + $0x3a] sm:$0xff]  ;;  %v419_v43 = vmul.f32 %v1393_v4, %v1532_v17  ;;  %v427_v45 = vadd.f32 %v411_v63, %v370_v21  ;;  %v627_v47 = vmul.f32 %v1420_v15, %v1544_v40 }
  0x1f   : > { %v532_v20 = vadd.f32 %v516_v23, %v479_v60  ;;  %v325_v23 = vadd.f32 %v309_v14, %v256_v13  ;;  %v472_v54 = vmul.f32 %v1398_v5, %v1556_v50  ;;  %v318_v60 = vadd.f32 %v302_v46, %v249_v33  ;;  %v1561_v13 = vld [vmem:[%s1388_s9 + $0x82] sm:$0xff] }
  0x20   : > { %v487_v31 = vadd.f32 %v471_v42, %v434_v9  ;;  %v680_v42 = vmul.f32 %v1425_v16, %v1547_v41  ;;  %v480_v9 = vadd.f32 %v464_v11, %v427_v45  ;;  %v355_v63 = vmul.f32 %v1429_v18, %v1386_v3  ;;  %v1576_v11 = vld [vmem:[%s1388_s9 + $0x99] sm:$0xff] }
  0x21   : > { %v589_v44 = vadd.f32 %v573_v35, %v532_v20  ;;  %v378_v52 = vadd.f32 %v362_v30, %v325_v23  ;;  %v1564_v35 = vld [vmem:[%s1388_s9 + $0x98] sm:$0xff]  ;;  %v412_v14 = vmul.f32 %v1432_v19, %v1393_v4  ;;  %v525_v21 = vmul.f32 %v1403_v6, %v1561_v13 }
  0x22   : > { %v540_v51 = vadd.f32 %v524_v55, %v487_v31  ;;  %v582_v33 = vmul.f32 %v1411_v10, %v1564_v35  ;;  %v533_v46 = vadd.f32 %v517_v22, %v480_v9  ;;  %v371_v30 = vadd.f32 %v355_v63, %v318_v60  ;;  %v1600_v63 = vld [vmem:[%s1388_s9 + $0x49] sm:$0xff] }
  0x23   : > { %v642_v62 = vadd.f32 %v626_v36, %v589_v44  ;;  %v435_v55 = vadd.f32 %v419_v43, %v378_v52  ;;  %v465_v18 = vmul.f32 %v1448_v27, %v1398_v5  ;;  %v635_v23 = vmul.f32 %v1420_v15, %v1576_v11  ;;  %v1586_v44 = vld [vmem:[%s1388_s9 + $0x48] sm:$0xff] }
  0x24   : > { %v597_v20 = vadd.f32 %v581_v56, %v540_v51  ;;  %v518_v43 = vmul.f32 %v1451_v28, %v1403_v6  ;;  %v428_v22 = vadd.f32 %v412_v14, %v371_v30  ;;  %v257_v45 = vmul.f32 %v1460_v32, %v1376_v1 }
  0x25   : > { %v695_v36 = vadd.f32 %v1469_v37, %v642_v62  ;;  %v488_v56 = vadd.f32 %v472_v54, %v435_v55  ;;  %v590_v37 = vadd.f32 %v574_v34, %v533_v46  ;;  %v575_v54 = vmul.f32 %v1411_v10, %v1586_v44  ;;  %v1597_v34 = vld [vmem:[%s1388_s9 + $0x9a] sm:$0xff] }
  0x26   : > { %v650_v31 = vadd.f32 %v634_v57, %v597_v20  ;;  %v310_v57 = vmul.f32 %v1472_v38, %v1381_v2  ;;  %v363_v60 = vmul.f32 %v1475_v39, %v1386_v3  ;;  %v481_v9 = vadd.f32 %v465_v18, %v428_v22 }
  0x27   : > { %1199 = vmatprep.mubr.msk.f32.mxu0 %vm719_vm1, %v695_v36  ;;  %v541_v52 = vadd.f32 %v525_v21, %v488_v56  ;;  %v643_v62 = vadd.f32 %v627_v47, %v590_v37  ;;  %v420_v20 = vmul.f32 %v1486_v48, %v1393_v4  ;;  %v688_v55 = vmul.f32 %v1425_v16, %v1597_v34 }
  0x28   : > { %v703_v51 = vadd.f32 %v687_v61, %v650_v31  ;;  %v326_v14 = vadd.f32 %v310_v57, %v257_v45  ;;  %v628_v21 = vmul.f32 %v1420_v15, %v1600_v63  ;;  %v534_v36 = vadd.f32 %v518_v43, %v481_v9  ;;  %v1612_v31 = vld [vmem:[%s1388_s9 + $0x4a] sm:$0xff] }
  0x29   : > { %v598_v61 = vadd.f32 %v582_v33, %v541_v52  ;;  %v696_v47 = vadd.f32 %v680_v42, %v643_v62  ;;  %v473_v30 = vmul.f32 %v1489_v49, %v1398_v5  ;;  %v250_v56 = vmul.f32 %v1495_v53, %v1376_v1  ;;  %v1626_v53 = vld [vmem:[%s1388_s9 + $0xa8] sm:$0xff] }
  0x2a   : > { %1211 = vmatprep.mubr.msk.f32.mxu1 %vm719_vm1, %v703_v51  ;;  %v379_v46 = vadd.f32 %v363_v60, %v326_v14  ;;  %v303_v33 = vmul.f32 %v1507_v59, %v1381_v2  ;;  %v356_v37 = vmul.f32 %v1525_v12, %v1386_v3  ;;  %v591_v42 = vadd.f32 %v575_v54, %v534_v36  ;;  %v1636_v60 = vld [vmem:[%s1388_s9 + $0xa9] sm:$0xff] }
  0x2b   : > { %v651_v18 = vadd.f32 %v635_v23, %v598_v61  ;;  %1200 = vmatmul.mubr.msk.f32.vlgmr.msra.gmra.mxu0 %vm719_vm1, %v696_v47  ;;  %v681_v43 = vmul.f32 %v1425_v16, %v1612_v31  ;;  %v526_v22 = vmul.f32 %v1504_v58, %v1403_v6  ;;  %v413_v59 = vmul.f32 %v1537_v29, %v1393_v4  ;;  %v1639_v62 = vld [vmem:[%s1388_s9 + $0xaa] sm:$0xff] }
  0x2c   : > { %v436_v23 = vadd.f32 %v420_v20, %v379_v46  ;;  %v319_v57 = vadd.f32 %v303_v33, %v250_v56  ;;  %v644_v51 = vadd.f32 %v628_v21, %v591_v42  ;;  %v583_v52 = vmul.f32 %v1411_v10, %v1626_v53 }
  0x2d   : > { %v704_v45 = vadd.f32 %v688_v55, %v651_v18  ;;  %v466_v54 = vmul.f32 %v1544_v40, %v1398_v5  ;;  %v258_v14 = vmul.f32 %v1532_v17, %v1376_v1  ;;  %v311_v20 = vmul.f32 %v1556_v50, %v1381_v2  ;;  %v1654_v18 = vld [vmem:[%s1388_s9 + $0x50] sm:$0xff] }
  0x2e   : > { %v489_v12 = vadd.f32 %v473_v30, %v436_v23  ;;  %v372_v9 = vadd.f32 %v356_v37, %v319_v57  ;;  %v364_v61 = vmul.f32 %v1561_v13, %v1386_v3  ;;  %v697_v55 = vadd.f32 %v681_v43, %v644_v51  ;;  %v1669_v57 = vld [vmem:[%s1388_s9 + $0x52] sm:$0xff] }
  0x2f   : > { %1212 = vmatmul.mubr.msk.f32.vlgmr.msra.gmra.mxu1 %vm719_vm1, %v704_v45  ;;  %v636_v47 = vmul.f32 %v1420_v15, %v1636_v60  ;;  %v689_v36 = vmul.f32 %v1425_v16, %v1639_v62  ;;  %v519_v30 = vmul.f32 %v1547_v41, %v1403_v6  ;;  %v327_v56 = vadd.f32 %v311_v20, %v258_v14  ;;  %v1666_v45 = vld [vmem:[%s1388_s9 + $0x51] sm:$0xff] }
  0x30   : > { %v542_v21 = vadd.f32 %v526_v22, %v489_v12  ;;  %v429_v46 = vadd.f32 %v413_v59, %v372_v9  ;;  %v421_v33 = vmul.f32 %v1564_v35, %v1393_v4  ;;  %1202 = vmatprep.mubr.msk.f32.mxu0 %vm719_vm1, %v697_v55  ;;  %v576_v42 = vmul.f32 %v1411_v10, %v1654_v18 }
  0x31   : > { %v474_v43 = vmul.f32 %v1576_v11, %v1398_v5  ;;  %v251_v23 = vmul.f32 %v1432_v19, %v1376_v1  ;;  %v380_v59 = vadd.f32 %v364_v61, %v327_v56  ;;  %v304_v51 = vmul.f32 %v1448_v27, %v1381_v2  ;;  %v1682_v61 = vld [vmem:[%s1388_s9 + $0xb0] sm:$0xff] }
  0x32   : > { %v599_v37 = vadd.f32 %v583_v52, %v542_v21  ;;  %v482_v22 = vadd.f32 %v466_v54, %v429_v46  ;;  %v357_v12 = vmul.f32 %v1451_v28, %v1386_v3  ;;  %v629_v9 = vmul.f32 %v1420_v15, %v1666_v45 }
  0x33   : > { %v682_v19 = vmul.f32 %v1425_v16, %v1669_v57  ;;  %v527_v54 = vmul.f32 %v1597_v34, %v1403_v6  ;;  %v437_v20 = vadd.f32 %v421_v33, %v380_v59  ;;  %v320_v55 = vadd.f32 %v304_v51, %v251_v23  ;;  %v1693_v33 = vld [vmem:[%s1388_s9 + $0xb1] sm:$0xff] }
  0x34   : > { %v652_v52 = vadd.f32 %v636_v47, %v599_v37  ;;  %v535_v14 = vadd.f32 %v519_v30, %v482_v22  ;;  %v414_v27 = vmul.f32 %v1586_v44, %v1393_v4  ;;  %v584_v21 = vmul.f32 %v1411_v10, %v1682_v61  ;;  %v1707_v51 = vld [vmem:[%s1388_s9 + $0xb2] sm:$0xff] }
  0x35   : > { %v467_v47 = vmul.f32 %v1600_v63, %v1398_v5  ;;  %v259_v46 = vmul.f32 %v1486_v48, %v1376_v1  ;;  %v490_v30 = vadd.f32 %v474_v43, %v437_v20  ;;  %v373_v37 = vadd.f32 %v357_v12, %v320_v55 }
  0x36   : > { %v705_v28 = vadd.f32 %v689_v36, %v652_v52  ;;  %v592_v56 = vadd.f32 %v576_v42, %v535_v14  ;;  %v312_v23 = vmul.f32 %v1489_v49, %v1381_v2  ;;  %v637_v36 = vmul.f32 %v1420_v15, %v1693_v33 }
  0x37   : > { %v520_v22 = vmul.f32 %v1612_v31, %v1403_v6  ;;  %v365_v59 = vmul.f32 %v1504_v58, %v1386_v3  ;;  %v422_v48 = vmul.f32 %v1626_v53, %v1393_v4  ;;  %v543_v43 = vadd.f32 %v527_v54, %v490_v30 }
  0x38   : > { %1214 = vmatprep.mubr.msk.f32.mxu1 %vm719_vm1, %v705_v28  ;;  %v645_v42 = vadd.f32 %v629_v9, %v592_v56  ;;  %v430_v12 = vadd.f32 %v414_v27, %v373_v37  ;;  %v328_v49 = vadd.f32 %v312_v23, %v259_v46  ;;  %v690_v52 = vmul.f32 %v1425_v16, %v1707_v51  ;;  %v1118_v37 = vld [vmem:[%s1388_s9 + $0xc0] sm:$0xff] }
  0x39   : > { %v577_v14 = vmul.f32 %v1411_v10, %v1439_v24  ;;  %v475_v20 = vmul.f32 %v1636_v60, %v1398_v5  ;;  %v252_v58 = vmul.f32 %v1537_v29, %v1376_v1  ;;  %v600_v54 = vadd.f32 %v584_v21, %v543_v43  ;;  %v1136_v23 = vld [vmem:[%s1388_s9 + $0xc1] sm:$0xff] }
  0x3a   : > { %v698_v9 = vadd.f32 %v682_v19, %v645_v42  ;;  %v483_v55 = vadd.f32 %v467_v47, %v430_v12  ;;  %v381_v28 = vadd.f32 %v365_v59, %v328_v49  ;;  %v630_v27 = vmul.f32 %v1420_v15, %v1442_v25 }
  0x3b   : > { %v683_v46 = vmul.f32 %v1425_v16, %v1445_v26  ;;  %v305_v56 = vmul.f32 %v1544_v40, %v1381_v2  ;;  %v358_v30 = vmul.f32 %v1547_v41, %v1386_v3  ;;  %v653_v29 = vadd.f32 %v637_v36, %v600_v54 }
  0x3c   : > { %1203 = vmatmul.mubr.msk.f32.gmra.mxu0 %vm719_vm1, %v698_v9  ;;  %v536_v19 = vadd.f32 %v520_v22, %v483_v55  ;;  %v438_v21 = vadd.f32 %v422_v48, %v381_v28  ;;  %v528_v47 = vmul.f32 %v1639_v62, %v1403_v6  ;;  %v585_v59 = vmul.f32 %v1411_v10, %v1118_v37  ;;  %v1737_v22 = vld [vmem:[%s1388_s9 + $0xc2] sm:$0xff] }
  0x3d   : > { %v638_v42 = vmul.f32 %v1420_v15, %v1136_v23  ;;  %v321_v43 = vadd.f32 %v305_v56, %v252_v58  ;;  %v415_v40 = vmul.f32 %v1654_v18, %v1393_v4  ;;  %v706_v41 = vadd.f32 %v690_v52, %v653_v29 }
  0x3e   : > { %v593_v12 = vadd.f32 %v577_v14, %v536_v19  ;;  %v491_v49 = vadd.f32 %v475_v20, %v438_v21  ;;  %v260_v36 = vmul.f32 %v1564_v35, %v1376_v1  ;;  %v468_v9 = vmul.f32 %v1666_v45, %v1398_v5 }
  0x3f   : > { %v374_v48 = vadd.f32 %v358_v30, %v321_v43  ;;  %v313_v54 = vmul.f32 %v1576_v11, %v1381_v2  ;;  %v366_v58 = vmul.f32 %v1597_v34, %v1386_v3  ;;  %1215 = vmatmul.mubr.msk.f32.gmra.mxu1 %vm719_vm1, %v706_v41  ;;  %v691_v20 = vmul.f32 %v1425_v16, %v1737_v22 }
  0x40   : > { %v646_v52 = vadd.f32 %v630_v27, %v593_v12  ;;  %v544_v14 = vadd.f32 %v528_v47, %v491_v49  ;;  %v521_v35 = vmul.f32 %v1669_v57, %v1403_v6  ;;  %v578_v28 = vmul.f32 %v1411_v10, %v1514_v0  ;;  %v1119_v49 = vld [vmem:[%s1388_s9 + $0xc8] sm:$0xff] }
  0x41   : > { %v431_v55 = vadd.f32 %v415_v40, %v374_v48  ;;  %v329_v56 = vadd.f32 %v313_v54, %v260_v36  ;;  %v423_v11 = vmul.f32 %v1682_v61, %v1393_v4  ;;  %v476_v27 = vmul.f32 %v1693_v33, %v1398_v5 }
  0x42   : > { %v699_v34 = vadd.f32 %v683_v46, %v646_v52  ;;  %v601_v30 = vadd.f32 %v585_v59, %v544_v14  ;;  %v253_v29 = vmul.f32 %v1586_v44, %v1376_v1  ;;  %v306_v47 = vmul.f32 %v1600_v63, %v1381_v2  ;;  %v1137_v52 = vld [vmem:[%s1388_s9 + $0xc9] sm:$0xff] }
  0x43   : > { %v484_v19 = vadd.f32 %v468_v9, %v431_v55  ;;  %v382_v21 = vadd.f32 %v366_v58, %v329_v56  ;;  %v359_v43 = vmul.f32 %v1612_v31, %v1386_v3  ;;  %v631_v46 = vmul.f32 %v1420_v15, %v1517_v7  ;;  %v1155_v56 = vld [vmem:[%s1388_s9 + $0xca] sm:$0xff] }
  0x44   : > { %1205 = vmatprep.mubr.msk.f32.mxu0 %vm719_vm1, %v699_v34  ;;  %v654_v40 = vadd.f32 %v638_v42, %v601_v30  ;;  %v684_v59 = vmul.f32 %v1425_v16, %v1520_v8  ;;  %v529_v44 = vmul.f32 %v1707_v51, %v1403_v6  ;;  %v322_v63 = vadd.f32 %v306_v47, %v253_v29 }
  0x45   : > { %v537_v41 = vadd.f32 %v521_v35, %v484_v19  ;;  %v439_v12 = vadd.f32 %v423_v11, %v382_v21  ;;  %v416_v31 = vmul.f32 %v1393_v4, %v1439_v24  ;;  %v586_v42 = vmul.f32 %v1411_v10, %v1119_v49  ;;  %v1120_v21 = vld [vmem:[%s1388_s9 + $0xd8] sm:$0xff] }
  0x46   : > { %v707_v36 = vadd.f32 %v691_v20, %v654_v40  ;;  %v469_v48 = vmul.f32 %v1398_v5, %v1442_v25  ;;  %v261_v9 = vmul.f32 %v1626_v53, %v1376_v1  ;;  %v375_v14 = vadd.f32 %v359_v43, %v322_v63 }
  0x47   : > { %v594_v54 = vadd.f32 %v578_v28, %v537_v41  ;;  %v492_v58 = vadd.f32 %v476_v27, %v439_v12  ;;  %v314_v35 = vmul.f32 %v1636_v60, %v1381_v2  ;;  %v639_v24 = vmul.f32 %v1420_v15, %v1137_v52 }
  0x48   : > { %1217 = vmatprep.mubr.msk.f32.mxu1 %vm719_vm1, %v707_v36  ;;  %v522_v20 = vmul.f32 %v1403_v6, %v1445_v26  ;;  %v367_v25 = vmul.f32 %v1639_v62, %v1386_v3  ;;  %v424_v53 = vmul.f32 %v1118_v37, %v1393_v4  ;;  %v432_v11 = vadd.f32 %v416_v31, %v375_v14  ;;  %v1156_v36 = vld [vmem:[%s1388_s9 + $0xda] sm:$0xff] }
  0x49   : > { %v647_v55 = vadd.f32 %v631_v46, %v594_v54  ;;  %v545_v28 = vadd.f32 %v529_v44, %v492_v58  ;;  %v330_v34 = vadd.f32 %v314_v35, %v261_v9  ;;  %v692_v60 = vmul.f32 %v1425_v16, %v1155_v56  ;;  %v1138_v44 = vld [vmem:[%s1388_s9 + $0xd9] sm:$0xff] }
  0x4a   : > { %v579_v30 = vmul.f32 %v1411_v10, %v1460_v32  ;;  %v477_v27 = vmul.f32 %v1136_v23, %v1398_v5  ;;  %v254_v26 = vmul.f32 %v1654_v18, %v1376_v1  ;;  %v485_v19 = vadd.f32 %v469_v48, %v432_v11 }
  0x4b   : > { %v700_v29 = vadd.f32 %v684_v59, %v647_v55  ;;  %v602_v62 = vadd.f32 %v586_v42, %v545_v28  ;;  %v383_v37 = vadd.f32 %v367_v25, %v330_v34  ;;  %v632_v47 = vmul.f32 %v1420_v15, %v1472_v38  ;;  %v1139_v28 = vld [vmem:[%s1388_s9 + $0xe1] sm:$0xff] }
  0x4c   : > { %v307_v43 = vmul.f32 %v1666_v45, %v1381_v2  ;;  %v360_v32 = vmul.f32 %v1669_v57, %v1386_v3  ;;  %v538_v18 = vadd.f32 %v522_v20, %v485_v19  ;;  %v530_v46 = vmul.f32 %v1737_v22, %v1403_v6 }
  0x4d   : > { %1206 = vmatmul.mubr.msk.f32.gmra.mxu0 %vm719_vm1, %v700_v29  ;;  %v655_v23 = vadd.f32 %v639_v24, %v602_v62  ;;  %v440_v40 = vadd.f32 %v424_v53, %v383_v37  ;;  %v685_v59 = vmul.f32 %v1425_v16, %v1475_v39  ;;  %v587_v38 = vmul.f32 %v1411_v10, %v1120_v21 }
  0x4e   : > { %v323_v41 = vadd.f32 %v307_v43, %v254_v26  ;;  %v417_v45 = vmul.f32 %v1393_v4, %v1514_v0  ;;  %v595_v57 = vadd.f32 %v579_v30, %v538_v18  ;;  %v262_v31 = vmul.f32 %v1682_v61, %v1376_v1 }
  0x4f   : > { %v708_v12 = vadd.f32 %v692_v60, %v655_v23  ;;  %v493_v63 = vadd.f32 %v477_v27, %v440_v40  ;;  %v470_v22 = vmul.f32 %v1398_v5, %v1517_v7  ;;  %v315_v39 = vmul.f32 %v1693_v33, %v1381_v2 }
  0x50   : > { %v376_v42 = vadd.f32 %v360_v32, %v323_v41  ;;  %v368_v48 = vmul.f32 %v1707_v51, %v1386_v3  ;;  %v648_v0 = vadd.f32 %v632_v47, %v595_v57  ;;  %v640_v54 = vmul.f32 %v1420_v15, %v1138_v44 }
  0x51   : > { %1218 = vmatmul.mubr.msk.f32.gmra.mxu1 %vm719_vm1, %v708_v12  ;;  %v546_v9 = vadd.f32 %v530_v46, %v493_v63  ;;  %v523_v1 = vmul.f32 %v1403_v6, %v1520_v8  ;;  %v331_v61 = vadd.f32 %v315_v39, %v262_v31  ;;  %v425_v7 = vmul.f32 %v1119_v49, %v1393_v4  ;;  %v1121_v8 = vld [vmem:[%s1388_s9 + $0xe0] sm:$0xff] }
  0x52   : > { %v433_v58 = vadd.f32 %v417_v45, %v376_v42  ;;  %v701_v14 = vadd.f32 %v685_v59, %v648_v0  ;;  %v693_v33 = vmul.f32 %v1425_v16, %v1156_v36  ;;  %v580_v51 = vmul.f32 %v1411_v10, %v1532_v17 }
  0x53   : > { %v603_v2 = vadd.f32 %v587_v38, %v546_v9  ;;  %v384_v35 = vadd.f32 %v368_v48, %v331_v61  ;;  %v478_v24 = vmul.f32 %v1137_v52, %v1398_v5  ;;  %v633_v4 = vmul.f32 %v1420_v15, %v1556_v50  ;;  %v1157_v52 = vld [vmem:[%s1388_s9 + $0xe2] sm:$0xff] }
  0x54   : > { %v486_v3 = vadd.f32 %v470_v22, %v433_v58  ;;  %1208 = vmatprep.mubr.msk.f32.mxu0 %vm719_vm1, %v701_v14  ;;  %v531_v53 = vmul.f32 %v1155_v56, %v1403_v6  ;;  %v686_v17 = vmul.f32 %v1425_v16, %v1561_v13  ;;  %v588_v5 = vmul.f32 %v1411_v10, %v1121_v8  ;;  %v1160_v10 = vld [vmem:[%s1903_s3] ss:$0 sm:$0xff] }
  0x55   : > { %v656_v20 = vadd.f32 %v640_v54, %v603_v2  ;;  %v441_v49 = vadd.f32 %v425_v7, %v384_v35  ;;  %v641_v50 = vmul.f32 %v1420_v15, %v1139_v28  ;;  %v694_v56 = vmul.f32 %v1425_v16, %v1157_v52 }
  0x56   : > { %v539_v25 = vadd.f32 %v523_v1, %v486_v3 }
  0x57   : > { %v709_v55 = vadd.f32 %v693_v33, %v656_v20  ;;  %v494_v34 = vadd.f32 %v478_v24, %v441_v49 }
  0x58   : > { %v596_v11 = vadd.f32 %v580_v51, %v539_v25 }
  0x59   : > { %1220 = vmatprep.mubr.msk.f32.mxu1 %vm719_vm1, %v709_v55  ;;  %v547_v30 = vadd.f32 %v531_v53, %v494_v34 }
  0x5a   : > { %v649_v60 = vadd.f32 %v633_v4, %v596_v11 }
  0x5b   : > { %v604_v6 = vadd.f32 %v588_v5, %v547_v30 }
  0x5c   : > { %v702_v27 = vadd.f32 %v686_v17, %v649_v60 }
  0x5d   : > { %v657_v26 = vadd.f32 %v641_v50, %v604_v6 }
  0x5e   : > { %1209 = vmatmul.mubr.msk.f32.gmra.mxu0 %vm719_vm1, %v702_v27 }
  0x5f   : > { %v710_v29 = vadd.f32 %v694_v56, %v657_v26 }
  0x61   : > { %1221 = vmatmul.mubr.msk.f32.gmra.mxu1 %vm719_vm1, %v710_v29 }
  0xeb   : > { %v1201_v15 = vpop.f32.mrf.mxu0 }
  0xec   : > { %v844_v16 = vadd.f32 %v1201_v15, %v1160_v10 }
  0xed   : > { %v838_v13 = vpop.f32.mrf.mxu0 }
  0xee   : > { %918 = vst.msk [vmem:[%s1851_s12 + $0x8] sm:$0xff] %vm719_vm1, %v844_v16  ;;  %v839_v19 = vadd.f32 %v1160_v10, %v838_v13 }
  0xef   : > { %v1213_v62 = vpop.f32.mrf.mxu1 }
  0xf0   : > { %v884_v37 = vadd.f32 %v1213_v62, %v1160_v10  ;;  %917 = vst.msk [vmem:[%s1851_s12] sm:$0xff] %vm719_vm1, %v839_v19 }
  0xf1   : > { %v878_v21 = vpop.f32.mrf.mxu1 }
  0xf2   : > { %926 = vst.msk [vmem:[%s1851_s12 + $0x48] sm:$0xff] %vm719_vm1, %v884_v37  ;;  %v879_v47 = vadd.f32 %v1160_v10, %v878_v21 }
  0xf4   : > { %925 = vst.msk [vmem:[%s1851_s12 + $0x40] sm:$0xff] %vm719_vm1, %v879_v47 }
  0xfc   : > { %v1204_v43 = vpop.f32.mrf.mxu0 }
  0xfd   : > { %v854_v32 = vadd.f32 %v1204_v43, %v1160_v10 }
  0xfe   : > { %v848_v23 = vpop.f32.mrf.mxu0 }
  0xff   : > { %920 = vst.msk [vmem:[%s1851_s12 + $0x18] sm:$0xff] %vm719_vm1, %v854_v32  ;;  %v849_v18 = vadd.f32 %v1160_v10, %v848_v23  ;;  %v1216_v40 = vpop.f32.mrf.mxu1 }
 0x100   : > { %v894_v46 = vadd.f32 %v1216_v40, %v1160_v10 }
 0x101   : > { %919 = vst.msk [vmem:[%s1851_s12 + $0x10] sm:$0xff] %vm719_vm1, %v849_v18  ;;  %v888_v59 = vpop.f32.mrf.mxu1 }
 0x102   : > { %928 = vst.msk [vmem:[%s1851_s12 + $0x58] sm:$0xff] %vm719_vm1, %v894_v46  ;;  %v889_v38 = vadd.f32 %v1160_v10, %v888_v59 }
 0x104   : > { %927 = vst.msk [vmem:[%s1851_s12 + $0x50] sm:$0xff] %vm719_vm1, %v889_v38 }
 0x10d   : > { %v1207_v44 = vpop.f32.mrf.mxu0 }
 0x10e   : > { %v864_v41 = vadd.f32 %v1207_v44, %v1160_v10 }
 0x10f   : > { %v858_v45 = vpop.f32.mrf.mxu0 }
 0x110   : > { %922 = vst.msk [vmem:[%s1851_s12 + $0x28] sm:$0xff] %vm719_vm1, %v864_v41  ;;  %v859_v12 = vadd.f32 %v1160_v10, %v858_v45 }
 0x111   : > { %v1219_v57 = vpop.f32.mrf.mxu1 }
 0x112   : > { %v904_v63 = vadd.f32 %v1219_v57, %v1160_v10  ;;  %921 = vst.msk [vmem:[%s1851_s12 + $0x20] sm:$0xff] %vm719_vm1, %v859_v12 }
 0x113   : > { %v898_v31 = vpop.f32.mrf.mxu1 }
 0x114   : > { %930 = vst.msk [vmem:[%s1851_s12 + $0x68] sm:$0xff] %vm719_vm1, %v904_v63  ;;  %v899_v36 = vadd.f32 %v1160_v10, %v898_v31 }
 0x116   : > { %929 = vst.msk [vmem:[%s1851_s12 + $0x60] sm:$0xff] %vm719_vm1, %v899_v36 }
 0x11e   : > { %v1210_v42 = vpop.f32.mrf.mxu0 }
 0x11f   : > { %v874_v22 = vadd.f32 %v1210_v42, %v1160_v10 }
 0x120   : > { %v868_v39 = vpop.f32.mrf.mxu0 }
 0x121   : > { %924 = vst.msk [vmem:[%s1851_s12 + $0x38] sm:$0xff] %vm719_vm1, %v874_v22  ;;  %v869_v48 = vadd.f32 %v1160_v10, %v868_v39  ;;  %v1222_v0 = vpop.f32.mrf.mxu1 }
 0x122   : > { %v914_v9 = vadd.f32 %v1222_v0, %v1160_v10 }
 0x123   : > { %923 = vst.msk [vmem:[%s1851_s12 + $0x30] sm:$0xff] %vm719_vm1, %v869_v48  ;;  %v908_v54 = vpop.f32.mrf.mxu1 }
 0x124   : > { %932 = vst.msk [vmem:[%s1851_s12 + $0x78] sm:$0xff] %vm719_vm1, %v914_v9  ;;  %v909_v58 = vadd.f32 %v1160_v10, %v908_v54 }
 0x126   : > { %931 = vst.msk [vmem:[%s1851_s12 + $0x70] sm:$0xff] %vm719_vm1, %v909_v58 }
 0x127 PF: > { %s14_s19 = sadd.s32 1, %s1304_s19   ;;  %s1905_s15 = smov %s1296_s17 }
 0x128   : > { %p11_p7 = scmp.ge.s32.totalorder %s14_s19, 6   ;;  %s1906_s16 = smov %s1300_s18 }
 0x129   : > { %s1907_s17 = smov %s1910_s20  ;;  %s1908_s18 = smov %s1914_s21 }
 0x12a   :  { %13 = sbr.rel (!%p11_p7) target bundleno = 3 (0x3), region = 71 }

</bundles_post_ra>
